<compile_context>
chip_gen: v6e
topology: v6e:2x2x1
jax: 0.10.0
libtpu: 0.0.40
codegen_flags: <defaults>
</compile_context>

<pallas_src>
import functools
import math

import jax
import jax.numpy as jnp
from jax.experimental import pallas as pl
from jax.experimental.pallas import tpu as pltpu

_LOG_2PI = math.log(2.0 * math.pi)


def _round_up(x, m):
    return ((x + m - 1) // m) * m


def _lsa_sos_loss_kernel(x_ref, xr_ref, s_ref, nlj_ref, out_ref, acc_ref, *,
                         inv_b, half_d_log2pi, tile_r, rows_valid, need_mask):
    """Grid = (chunk, k).  Streams (tile_r, C) row-tiles of the flattened
    x / x_r views; each chunk's partial rec-sum + the flow term land in its
    own lane-dense output row."""
    k = pl.program_id(1)
    k_steps = pl.num_programs(1)

    @pl.when(k == 0)
    def _init():
        acc_ref[...] = jnp.zeros_like(acc_ref)

    diff = x_ref[...].astype(jnp.float32) - xr_ref[...].astype(jnp.float32)
    d2 = diff * diff

    def _accumulate(vals):
        # Sublane-only fold into the (1, C) lane-vector accumulator: no
        # cross-lane XLU reduce and no scalar loop-carried dependency.
        acc_ref[...] += jnp.sum(vals, axis=0, keepdims=True)

    if need_mask:
        # Unclamped global tile index of this grid step.
        t = pl.program_id(0) * k_steps + k
        tile_needs_mask = (t + 1) * tile_r > rows_valid

        @pl.when(tile_needs_mask)
        def _masked():
            # Kills (a) padded rows of the partial last tile and (b) the
            # clamped duplicate tile of an uneven chunk split.
            row = jax.lax.broadcasted_iota(jnp.int32, d2.shape, 0)
            _accumulate(jnp.where(t * tile_r + row < rows_valid, d2, 0.0))

        @pl.when(jnp.logical_not(tile_needs_mask))
        def _plain():
            _accumulate(d2)
    else:
        _accumulate(d2)

    @pl.when(k == k_steps - 1)
    def _finalize():
        rec_part = jnp.sum(acc_ref[...], keepdims=True)             # (1, 1)
        s = s_ref[...].astype(jnp.float32)                          # (B, D)
        nlj = nlj_ref[...].astype(jnp.float32)                      # (1, B)
        # arg = mean_i(0.5*sum_j s_ij^2 + 0.5*D*log(2*pi) + nlj_i)
        arg = (0.5 * jnp.sum(s * s, keepdims=True)
               + jnp.sum(nlj, keepdims=True)) * inv_b + half_d_log2pi
        # Pack [rec_partial, arg] into lanes 0..1 of one lane-dense 128 row.
        lane = jax.lax.broadcasted_iota(jnp.int32, out_ref.shape, 2)
        out = jnp.where(lane == 0, rec_part.reshape(1, 1, 1), 0.0)
        out = jnp.where(lane == 1, arg.reshape(1, 1, 1), out)
        out_ref[...] = out


def _pick_view_params(total):
    """Choose a lane-dense (rows, C) view of the flattened tensors.
    Returns (C, rows, pad_elements)."""
    for c in (1024, 512, 256, 128):
        if total % c == 0 and (total // c) >= 16:
            return c, total // c, 0
    # Ragged / tiny fallback: zero-pad the flat view up to a (16, 128)
    # multiple.  Exact (identical zero pads in x and x_r give zero diff) but
    # costs one extra copy of each input.
    c = 128
    padded = _round_up(max(total, 1), 16 * c)
    return c, padded // c, padded - total


def _tile_budget():
    """(per-input streamed tile bytes, explicit scoped-VMEM limit), re-derived
    per TPU generation (v7x has half the VMEM of v5e/v6e)."""
    try:
        phys = pltpu.get_tpu_info().vmem_capacity_bytes
    except Exception:
        phys = None
    if phys is not None and phys > (64 << 20):        # v5e / v6e: 128 MiB VMEM
        return 4 << 20, 64 << 20
    if phys is not None:                              # v7x-class: 64 MiB VMEM
        return 6 << 20, 48 << 20
    return 4 << 20, 40 << 20                          # unknown: conservative


def lsa_sos_loss(x, x_r, s, negative_log_jacob, lam=1.0, average=True,
                 max_tile_rows=None):
    """LSASOSLoss forward.  Returns (total_loss, rec_loss, arg_loss)."""
    assert average, "only average=True is implemented"
    assert x.shape == x_r.shape

    b = x.shape[0]
    total = 1
    for dim in x.shape:
        total *= dim
    sf = s.reshape(b, -1)
    d_lat = sf.shape[1]
    nljf = negative_log_jacob.reshape(1, b)          # lane-dense, not (B, 1)

    # Flatten to a sublane/lane-dense (rows, C) view (free reshape for the
    # common divisible case; zero-padded copy only for ragged totals).
    c, rows, pad = _pick_view_params(total)
    if pad:
        xv = jnp.pad(x.reshape(-1), (0, pad)).reshape(rows, c)
        xrv = jnp.pad(x_r.reshape(-1), (0, pad)).reshape(rows, c)
    else:
        xv = x.reshape(rows, c)
        xrv = x_r.reshape(rows, c)

    itemsize = jnp.dtype(xv.dtype).itemsize
    tile_bytes, vmem_limit = _tile_budget()

    # Row tile: multiple of 16 sublanes (dense for f32 and bf16), sized to the
    # per-generation byte budget, capped at the array, then rebalanced so the
    # last tile is not nearly empty.
    cap = max(16, (tile_bytes // (c * itemsize)) // 16 * 16)
    if max_tile_rows is not None:                     # test / tuning override
        cap = max(16, min(cap, (max_tile_rows // 16) * 16))
    cap = min(cap, max(16, (rows // 16) * 16))        # keep block <= array
    n_tiles = pl.cdiv(rows, cap)
    tile_r = min(cap, _round_up(pl.cdiv(rows, n_tiles), 16))
    n_tiles = pl.cdiv(rows, tile_r)

    # Megacore split: leading "parallel" axis over row-chunks (2 TCs on v7x;
    # neutral on single-TC v5e/v6e).
    n_chunks = 2 if n_tiles >= 2 else 1
    k_steps = pl.cdiv(n_tiles, n_chunks)
    need_clamp = (n_chunks * k_steps) != n_tiles
    need_mask = need_clamp or (rows % tile_r != 0)

    if need_clamp:
        last_t = n_tiles - 1
        stream_map = lambda i, k: (jnp.minimum(i * k_steps + k, last_t), 0)
    else:
        stream_map = lambda i, k: (i * k_steps + k, 0)

    kernel = functools.partial(
        _lsa_sos_loss_kernel,
        inv_b=1.0 / float(b),
        half_d_log2pi=0.5 * float(d_lat) * _LOG_2PI,
        tile_r=tile_r,
        rows_valid=rows,
        need_mask=need_mask,
    )

    cost = pl.CostEstimate(
        flops=3 * rows * c + 3 * b * d_lat,
        transcendentals=0,
        bytes_accessed=(2 * rows * c * itemsize
                        + b * d_lat * jnp.dtype(sf.dtype).itemsize
                        + b * jnp.dtype(nljf.dtype).itemsize
                        + n_chunks * 128 * 4),
    )

    out = pl.pallas_call(
        kernel,
        out_shape=jax.ShapeDtypeStruct((n_chunks, 1, 128), jnp.float32),
        grid=(n_chunks, k_steps),
        in_specs=[
            pl.BlockSpec((tile_r, c), stream_map),            # x rows (streamed)
            pl.BlockSpec((tile_r, c), stream_map),            # x_r rows (streamed)
            pl.BlockSpec((b, d_lat), lambda i, k: (0, 0)),    # s (resident)
            pl.BlockSpec((1, b), lambda i, k: (0, 0)),        # nlj (resident)
        ],
        out_specs=pl.BlockSpec((1, 1, 128), lambda i, k: (i, 0, 0)),
        scratch_shapes=[pltpu.VMEM((1, c), jnp.float32)],     # lane accumulator
        compiler_params=pltpu.CompilerParams(
            dimension_semantics=("parallel", "arbitrary"),
            vmem_limit_bytes=vmem_limit),
        cost_estimate=cost,
    )(xv, xrv, sf, nljf)

    rec = jnp.sum(out[:, 0, 0]) * (1.0 / float(b))   # combine per-chunk partials
    arg = out[0, 0, 1]
    tot = rec + lam * arg
    return tot, rec, arg


def _reference(x, x_r, s, nlj, lam=1.0):
    b = x.shape[0]
    xf = x.reshape(b, -1).astype(jnp.float32)
    xrf = x_r.reshape(b, -1).astype(jnp.float32)
    rec = jnp.mean(jnp.sum((xf - xrf) ** 2, axis=1))
    sf = s.reshape(b, -1).astype(jnp.float32)
    d = sf.shape[1]
    nlog_probs = 0.5 * jnp.sum(sf ** 2, axis=1) + 0.5 * d * _LOG_2PI
    arg = jnp.mean(nlog_probs + nlj.reshape(b).astype(jnp.float32))
    return rec + lam * arg, rec, arg


def _check(got, want, rtol, atol, tag):
    for g, w, name in zip(got, want, ("tot", "rec", "arg")):
        assert jnp.allclose(g, w, rtol=rtol, atol=atol), (tag, name, g, w)


if __name__ == "__main__":
    key = jax.random.PRNGKey(0)
    k1, k2, k3, k4 = jax.random.split(key, 4)

    # Case 1: small f32 image tensors, single-tile path (no mask, one chunk).
    B, Cc, H, W, D = 2, 4, 16, 16, 64
    x = jax.random.normal(k1, (B, Cc, H, W), dtype=jnp.float32)
    x_r = jax.random.normal(k2, (B, Cc, H, W), dtype=jnp.float32)
    s = jax.random.normal(k3, (B, D), dtype=jnp.float32)
    nlj = jax.random.normal(k4, (B,), dtype=jnp.float32)
    got = lsa_sos_loss(x, x_r, s, nlj, lam=1.0)
    jax.block_until_ready(got[0])
    _check(got, _reference(x, x_r, s, nlj, lam=1.0), 1e-5, 1e-4, "case1")

    # Case 2: bf16 inputs with a ragged element count (zero-padded flat view,
    # in-kernel upcast to f32).
    B2, C2, H2, W2, D2 = 2, 3, 10, 10, 32
    x2 = jax.random.normal(k1, (B2, C2, H2, W2), dtype=jnp.bfloat16)
    x2r = jax.random.normal(k2, (B2, C2, H2, W2), dtype=jnp.bfloat16)
    s2 = jax.random.normal(k3, (B2, D2), dtype=jnp.float32)
    nlj2 = jax.random.normal(k4, (B2,), dtype=jnp.float32)
    got2 = lsa_sos_loss(x2, x2r, s2, nlj2, lam=0.5)
    jax.block_until_ready(got2[0])
    _check(got2, _reference(x2, x2r, s2, nlj2, lam=0.5), 1e-4, 1e-4, "case2")

    # Case 3: multi-tile streaming + 2-chunk "parallel" grid with an uneven
    # tile split (clamped duplicate tile) and a partial (masked) last tile.
    B3, C3, H3, W3, D3 = 2, 3, 40, 40, 48
    x3 = jax.random.normal(k1, (B3, C3, H3, W3), dtype=jnp.float32)
    x3r = jax.random.normal(k2, (B3, C3, H3, W3), dtype=jnp.float32)
    s3 = jax.random.normal(k3, (B3, D3), dtype=jnp.float32)
    nlj3 = jax.random.normal(k4, (B3,), dtype=jnp.float32)
    got3 = lsa_sos_loss(x3, x3r, s3, nlj3, lam=2.0, max_tile_rows=16)
    jax.block_until_ready(got3[0])
    _check(got3, _reference(x3, x3r, s3, nlj3, lam=2.0), 1e-5, 1e-4, "case3")

    print("KERNEL_OK")
</pallas_src>

<mosaic_0001>
module attributes {stable_mosaic.version = 11 : i64} {
  func.func @_lsa_sos_loss_kernel(%arg0: i32, %arg1: i32, %arg2: memref<16x128xf32, #tpu.memory_space<vmem>>, %arg3: memref<16x128xf32, #tpu.memory_space<vmem>>, %arg4: memref<2x64xf32, #tpu.memory_space<vmem>>, %arg5: memref<1x2xf32, #tpu.memory_space<vmem>>, %arg6: memref<1x1x128xf32, #tpu.memory_space<vmem>>, %arg7: memref<1x128xf32, #tpu.memory_space<vmem>>) attributes {dimension_semantics = [#tpu.dimension_semantics<parallel>, #tpu.dimension_semantics<arbitrary>], iteration_bounds = array<i64: 1, 1>, scalar_prefetch = 0 : i64, scratch_operands = 1 : i64, tpu.core_type = #tpu.core_type<tc>, window_params = [{transform_indices = @transform_0, window_bounds = array<i64: 16, 128>}, {transform_indices = @transform_1, window_bounds = array<i64: 16, 128>}, {pipeline_mode = #tpu.pipeline_mode<synchronous>, transform_indices = @transform_2, window_bounds = array<i64: 2, 64>}, {pipeline_mode = #tpu.pipeline_mode<synchronous>, transform_indices = @transform_3, window_bounds = array<i64: 1, 2>}, {transform_indices = @transform_4, window_bounds = array<i64: 1, 1, 128>}]} {
    %c0_i32 = arith.constant 0 : i32
    %0 = arith.cmpi eq, %arg1, %c0_i32 : i32
    %1 = arith.extui %0 : i1 to i32
    %c0_i32_0 = arith.constant 0 : i32
    %2 = arith.cmpi ne, %1, %c0_i32_0 : i32
    scf.if %2 {
      %cst_10 = arith.constant 0.000000e+00 : f32
      %15 = vector.broadcast %cst_10 : f32 to vector<1x128xf32>
      %c0_11 = arith.constant 0 : index
      %c0_12 = arith.constant 0 : index
      %16 = vector.load %arg7[%c0_11, %c0_12] : memref<1x128xf32, #tpu.memory_space<vmem>>, vector<1x128xf32>
      tpu.vector_store %arg7[%c0_11, %c0_12], %15 {strides = array<i32>} : memref<1x128xf32, #tpu.memory_space<vmem>>, vector<1x128xf32>,
    } else {
    }
    %c0 = arith.constant 0 : index
    %c0_1 = arith.constant 0 : index
    %3 = vector.load %arg2[%c0, %c0_1] : memref<16x128xf32, #tpu.memory_space<vmem>>, vector<16x128xf32>
    %c0_2 = arith.constant 0 : index
    %c0_3 = arith.constant 0 : index
    %4 = vector.load %arg3[%c0_2, %c0_3] : memref<16x128xf32, #tpu.memory_space<vmem>>, vector<16x128xf32>
    %5 = arith.subf %3, %4 : vector<16x128xf32>
    %6 = arith.mulf %5, %5 : vector<16x128xf32>
    %c0_4 = arith.constant 0 : index
    %c0_5 = arith.constant 0 : index
    %7 = vector.load %arg7[%c0_4, %c0_5] : memref<1x128xf32, #tpu.memory_space<vmem>>, vector<1x128xf32>
    %cst = arith.constant dense<0.000000e+00> : vector<128xf32>
    %8 = vector.multi_reduction <add>, %6, %cst [0] : vector<16x128xf32> to vector<128xf32>
    %9 = vector.shape_cast %8 : vector<128xf32> to vector<1x128xf32>
    %10 = arith.addf %7, %9 : vector<1x128xf32>
    %c0_6 = arith.constant 0 : index
    %c0_7 = arith.constant 0 : index
    %11 = vector.load %arg7[%c0_6, %c0_7] : memref<1x128xf32, #tpu.memory_space<vmem>>, vector<1x128xf32>
    tpu.vector_store %arg7[%c0_6, %c0_7], %10 {strides = array<i32>} : memref<1x128xf32, #tpu.memory_space<vmem>>, vector<1x128xf32>,
    %c0_i32_8 = arith.constant 0 : i32
    %12 = arith.cmpi eq, %arg1, %c0_i32_8 : i32
    %13 = arith.extui %12 : i1 to i32
    %c0_i32_9 = arith.constant 0 : i32
    %14 = arith.cmpi ne, %13, %c0_i32_9 : i32
    scf.if %14 {
      %c0_10 = arith.constant 0 : index
      %c0_11 = arith.constant 0 : index
      %15 = vector.load %arg7[%c0_10, %c0_11] : memref<1x128xf32, #tpu.memory_space<vmem>>, vector<1x128xf32>
      %16 = vector.shape_cast %15 : vector<1x128xf32> to vector<1x1x128xf32>
      %cst_12 = arith.constant dense<0.000000e+00> : vector<1xf32>
      %17 = vector.multi_reduction <add>, %16, %cst_12 [1, 2] : vector<1x1x128xf32> to vector<1xf32>
      %18 = vector.shape_cast %17 : vector<1xf32> to vector<1x1x1xf32>
      %19 = vector.extract %18[0, 0, 0] : f32 from vector<1x1x1xf32>
      %20 = vector.broadcast %19 : f32 to vector<1x1xf32>
      %c0_13 = arith.constant 0 : index
      %c0_14 = arith.constant 0 : index
      %21 = vector.load %arg4[%c0_13, %c0_14] : memref<2x64xf32, #tpu.memory_space<vmem>>, vector<2x64xf32>
      %c0_15 = arith.constant 0 : index
      %c0_16 = arith.constant 0 : index
      %22 = vector.load %arg5[%c0_15, %c0_16] : memref<1x2xf32, #tpu.memory_space<vmem>>, vector<1x2xf32>
      %23 = arith.mulf %21, %21 : vector<2x64xf32>
      %24 = vector.shape_cast %23 : vector<2x64xf32> to vector<1x2x64xf32>
      %cst_17 = arith.constant dense<0.000000e+00> : vector<1xf32>
      %25 = vector.multi_reduction <add>, %24, %cst_17 [1, 2] : vector<1x2x64xf32> to vector<1xf32>
      %26 = vector.shape_cast %25 : vector<1xf32> to vector<1x1x1xf32>
      %27 = vector.extract %26[0, 0, 0] : f32 from vector<1x1x1xf32>
      %28 = vector.broadcast %27 : f32 to vector<1x1xf32>
      %cst_18 = arith.constant 5.000000e-01 : f32
      %29 = vector.broadcast %cst_18 : f32 to vector<1x1xf32>
      %30 = arith.mulf %29, %28 : vector<1x1xf32>
      %31 = vector.shape_cast %22 : vector<1x2xf32> to vector<1x1x2xf32>
      %cst_19 = arith.constant dense<0.000000e+00> : vector<1xf32>
      %32 = vector.multi_reduction <add>, %31, %cst_19 [1, 2] : vector<1x1x2xf32> to vector<1xf32>
      %33 = vector.shape_cast %32 : vector<1xf32> to vector<1x1x1xf32>
      %34 = vector.extract %33[0, 0, 0] : f32 from vector<1x1x1xf32>
      %35 = vector.broadcast %34 : f32 to vector<1x1xf32>
      %36 = arith.addf %30, %35 : vector<1x1xf32>
      %cst_20 = arith.constant 5.000000e-01 : f32
      %37 = vector.broadcast %cst_20 : f32 to vector<1x1xf32>
      %38 = arith.mulf %36, %37 : vector<1x1xf32>
      %cst_21 = arith.constant 58.8120651 : f32
      %39 = vector.broadcast %cst_21 : f32 to vector<1x1xf32>
      %40 = arith.addf %38, %39 : vector<1x1xf32>
      %41 = tpu.iota {dimensions = array<i32: 2>} : vector<1x1x128xi32>
      %c0_i32_22 = arith.constant 0 : i32
      %42 = vector.broadcast %c0_i32_22 : i32 to vector<1x1x128xi32>
      %43 = arith.cmpi eq, %41, %42 : vector<1x1x128xi32>
      %44 = vector.shape_cast %20 : vector<1x1xf32> to vector<1x1x1xf32>
      %cst_23 = arith.constant 0.000000e+00 : f32
      %45 = vector.shape_cast %44 : vector<1x1x1xf32> to vector<1x1x1xf32>
      %46 = vector.broadcast %45 : vector<1x1x1xf32> to vector<1x1x128xf32>
      %47 = vector.broadcast %cst_23 : f32 to vector<1x1x128xf32>
      %48 = arith.select %43, %46, %47 : vector<1x1x128xi1>, vector<1x1x128xf32>
      %c1_i32 = arith.constant 1 : i32
      %49 = vector.broadcast %c1_i32 : i32 to vector<1x1x128xi32>
      %50 = arith.cmpi eq, %41, %49 : vector<1x1x128xi32>
      %51 = vector.shape_cast %40 : vector<1x1xf32> to vector<1x1x1xf32>
      %52 = vector.shape_cast %51 : vector<1x1x1xf32> to vector<1x1x1xf32>
      %53 = vector.broadcast %52 : vector<1x1x1xf32> to vector<1x1x128xf32>
      %54 = arith.select %50, %53, %48 : vector<1x1x128xi1>, vector<1x1x128xf32>
      %c0_24 = arith.constant 0 : index
      %c0_25 = arith.constant 0 : index
      %c0_26 = arith.constant 0 : index
      %55 = vector.load %arg6[%c0_24, %c0_25, %c0_26] : memref<1x1x128xf32, #tpu.memory_space<vmem>>, vector<1x1x128xf32>
      tpu.vector_store %arg6[%c0_24, %c0_25, %c0_26], %54 {strides = array<i32>} : memref<1x1x128xf32, #tpu.memory_space<vmem>>, vector<1x1x128xf32>,
    } else {
    }
    return
  }
  func.func @transform_0(%arg0: i32, %arg1: i32) -> (i32, i32) {
    %c1_i32 = arith.constant 1 : i32
    %0 = arith.muli %arg0, %c1_i32 : i32
    %1 = arith.addi %0, %arg1 : i32
    %c0_i32 = arith.constant 0 : i32
    %c0_i32_0 = arith.constant 0 : i32
    return %1, %c0_i32 : i32, i32
  }
  func.func @transform_1(%arg0: i32, %arg1: i32) -> (i32, i32) {
    %c1_i32 = arith.constant 1 : i32
    %0 = arith.muli %arg0, %c1_i32 : i32
    %1 = arith.addi %0, %arg1 : i32
    %c0_i32 = arith.constant 0 : i32
    %c0_i32_0 = arith.constant 0 : i32
    return %1, %c0_i32 : i32, i32
  }
  func.func @transform_2(%arg0: i32, %arg1: i32) -> (i32, i32) {
    %c0_i32 = arith.constant 0 : i32
    %c0_i32_0 = arith.constant 0 : i32
    %c0_i32_1 = arith.constant 0 : i32
    return %c0_i32, %c0_i32_0 : i32, i32
  }
  func.func @transform_3(%arg0: i32, %arg1: i32) -> (i32, i32) {
    %c0_i32 = arith.constant 0 : i32
    %c0_i32_0 = arith.constant 0 : i32
    %c0_i32_1 = arith.constant 0 : i32
    return %c0_i32, %c0_i32_0 : i32, i32
  }
  func.func @transform_4(%arg0: i32, %arg1: i32) -> (i32, i32, i32) {
    %c0_i32 = arith.constant 0 : i32
    %c0_i32_0 = arith.constant 0 : i32
    %c0_i32_1 = arith.constant 0 : i32
    return %arg0, %c0_i32, %c0_i32_0 : i32, i32, i32
  }
}

</mosaic_0001>

<bundles_post_ra>
// kernel: tpu_custom_call.1
= control target key start
LH: loop header
LB: loop body
LE: loop exit
PB: predicated region body
PF: predicated region fallthrough
CT: control target
= control target key end

     0   :  { %9 = vsyncpa [#allocation4], 0  ;;  %s275_s0 = inlined_call_operand.hbm [shape: f32[16,128], index: 0, kind: input, shape index: {}]   ;;  %s276_s1 = inlined_call_operand.hbm [shape: f32[16,128], index: 1, kind: input, shape index: {}]   ;;  %s277_s2 = inlined_call_operand.vmem [shape: f32[2,64], index: 2, kind: input, shape index: {}]   ;;  %s278_s3 = inlined_call_operand.vmem [shape: f32[1,2], index: 3, kind: input, shape index: {}]   ;;  %s279_s4 = inlined_call_operand.hbm [shape: f32[1,1,128], index: 4, kind: output, shape index: {}]  }
   0x1   :  { %10 = vsyncpa [#allocation7], 0 }
   0x2   :  { %11 = vsyncpa [#allocation5], 0  ;;  %s229_s15 = smov [#allocation3]  }
   0x3   :  { %s21_s16 = sshll.u32 %s229_s15, 4  ;;  %s22_s16 = int_to_ptr.vmem [resolvable:$true] %s21_s16 }
   0x4   :  { %s171_s17 = scalar_lea.vmem %s22_s16, 256  ;;  %p176_p1 = scmp.lt.s32.totalorder %s22_s16, %s22_s16 }
   0x5   :  { %p172_p0 = scmp.ne.s32.totalorder %s22_s16, %s171_s17  ;;  %p177_p2 = scmp.lt.s32.totalorder %s171_s17, %s171_s17 }
   0x7   :  { %p178_p3 = por %p177_p2, %p176_p1 }
   0x9   :  { %p179_p4 = pnand %p178_p3, %p172_p0 }
   0xb   :  { %182 = shalt.err (!%p179_p4)
}
   0xc   :  { %s230_s18 = smov 128   ;;  %s231_s19 = smov 8  }
   0xd   :  { %27 = dma.hbm_to_vmem [thread:$0]  %s275_s0, 256, %s22_s16, [#allocation4], %s230_s18, %s230_s18, %s231_s19  }
   0xe   :  { %s232_s22 = smov [#allocation6]  }
   0xf   :  { %s37_s23 = sshll.u32 %s232_s22, 4  ;;  %s38_s23 = int_to_ptr.vmem [resolvable:$true] %s37_s23 }
  0x10   :  { %s191_s24 = scalar_lea.vmem %s38_s23, 256  ;;  %p196_p6 = scmp.lt.s32.totalorder %s38_s23, %s38_s23 }
  0x11   :  { %p192_p5 = scmp.ne.s32.totalorder %s38_s23, %s191_s24  ;;  %p197_p7 = scmp.lt.s32.totalorder %s191_s24, %s191_s24 }
  0x13   :  { %p198_p8 = por %p197_p7, %p196_p6 }
  0x15   :  { %p199_p9 = pnand %p198_p8, %p192_p5 }
  0x17   :  { %202 = shalt.err (!%p199_p9)
}
  0x18   :  { %43 = dma.hbm_to_vmem [thread:$0]  %s276_s1, 256, %s38_s23, [#allocation7], %s230_s18, %s230_s18, %s231_s19  }
  0x19   :  { %223 = dma.done.wait [#allocation4], 256  }
  0x1a   :  { %224 = vsyncadd [#allocation4], 4294967040 }
  0x1b   :  { %225 = dma.done.wait [#allocation7], 256  }
  0x1c   :  { %226 = vsyncadd [#allocation7], 4294967040  ;;  %v233_v0 = vmov 0.0   ;;  %vm112_vm0 = vcmask 8192   ;;  %v97_v1 = vld [vmem:[%s278_s3] sm:$0x1]  ;;  %v127_v46 = vlaneseq }
  0x1d   :  { %62 = vst [vmem:[#allocation2] sm:$0x1] %v233_v0  ;;  %v63_v2 = vld [vmem:[#allocation3] sm:$0xff]  ;;  %v64_v3 = vld [vmem:[#allocation3 + $0x8] sm:$0xff]  ;;  %v113_v4 = vsel %vm112_vm0, %v97_v1, 0.0  ;;  %v65_v5 = vld [vmem:[#allocation6] sm:$0xff] }
  0x1e   :  { %v66_v6 = vld [vmem:[#allocation6 + $0x8] sm:$0xff]  ;;  %114 = vadd.xlane.f32.xlu1 %v113_v4  ;;  %v67_v7 = vsub.f32 %v63_v2, %v65_v5  ;;  %vm85_vm1 = vcmask 1040384   ;;  %vm99_vm2 = vcmask 517120   ;;  %v128_v48 = vand.u32 127, %v127_v46  ;;  %s234_s30 = smov [#allocation8]  }
  0x1f   :  { %v68_v8 = vsub.f32 %v64_v3, %v66_v6  ;;  %v96_v20 = vld [vmem:[%s277_s2] sm:$0x3]  ;;  %s141_s5 = sshll.u32 %s234_s30, 4  ;;  %s142_s5 = int_to_ptr.vmem [resolvable:$true] %s141_s5 }
  0x20   :  { %v69_v9 = vmul.f32 %v67_v7, %v67_v7  ;;  %v98_v21 = vmul.f32 %v96_v20, %v96_v20  ;;  %vm129_vm3 = vcmp.eq.s32.totalorder %v128_v48, 0  ;;  %vm132_vm4 = vcmp.eq.s32.totalorder %v128_v48, 1  ;;  %s203_s6 = scalar_lea.vmem %s142_s5, 16  ;;  %s207_s7 = scalar_lea.vmem %s142_s5, 32 }
  0x21   :  { %v70_v10 = vmul.f32 %v68_v8, %v68_v8  ;;  %p204_p10 = scmp.ne.s32.totalorder %s142_s5, %s203_s6  ;;  %p208_p11 = scmp.lt.s32.totalorder %s142_s5, %s142_s5 }
  0x22   :  { %v100_v24 = vsel %vm99_vm2, %v98_v21, 0.0  ;;  %p209_p12 = scmp.lt.s32.totalorder %s207_s7, %s203_s6 }
  0x23   :  { %v72_v11 = vadd.f32 %v70_v10, %v69_v9 }
  0x24   :  { %v71_v17 = vld [vmem:[#allocation2] sm:$0x1]  ;;  %p210_p13 = por %p209_p12, %p208_p11 }
  0x25   :  { %v73_v12 = vrot.slane %v72_v11, 4 }
  0x26   :  { %p211_p0 = pnand %p210_p13, %p204_p10 }
  0x27   :  { %v74_v13 = vadd.f32 %v73_v12, %v72_v11 }
  0x29   :  { %v75_v14 = vrot.slane %v74_v13, 2 }
  0x2b   :  { %v76_v15 = vadd.f32 %v75_v14, %v74_v13 }
  0x2d   :  { %v77_v16 = vrot.slane %v76_v15, 1 }
  0x2f   :  { %v78_v18 = vadd.f32 %v77_v16, %v76_v15 }
  0x31   :  { %v79_v19 = vadd.f32 %v78_v18, %v71_v17 }
  0x33   :  { %80 = vst [vmem:[#allocation2] sm:$0x1] %v79_v19 }
  0x3a   :  { %v84_v22 = vld [vmem:[#allocation2] sm:$0x1] }
  0x3b   :  { %v86_v23 = vsel %vm85_vm1, %v84_v22, 0.0 }
  0x3c   :  { %87 = vadd.xlane.f32.xlu0 %v86_v23 }
  0x40   :  { %101 = vadd.xlane.f32.xlu0 %v100_v24 }
  0xa7   :  { %v115_v25 = vpop.xlane.xlu1 %114 }
  0xa8   :  { %v116_v26 = vrot.slane %v115_v25, 4 }
  0xaa   :  { %v117_v27 = vadd.f32 %v116_v26, %v115_v25 }
  0xac   :  { %v118_v31 = vrot.slane %v117_v27, 2 }
  0xae   :  { %v119_v37 = vadd.f32 %v118_v31, %v117_v27 }
  0xb0   :  { %v120_v42 = vrot.slane %v119_v37, 1 }
  0xb2   :  { %v121_v45 = vadd.f32 %v120_v42, %v119_v37 }
  0xc5   :  { %v88_v28 = vpop.xlane.xlu0 %87 }
  0xc6   :  { %v89_v29 = vrot.slane %v88_v28, 4 }
  0xc8   :  { %v90_v30 = vadd.f32 %v89_v29, %v88_v28 }
  0xc9   :  { %v102_v32 = vpop.xlane.xlu0 %101 }
  0xca   :  { %v91_v33 = vrot.slane %v90_v30, 2  ;;  %v103_v34 = vrot.slane %v102_v32, 4 }
  0xcc   :  { %v104_v35 = vadd.f32 %v103_v34, %v102_v32  ;;  %v92_v36 = vadd.f32 %v91_v33, %v90_v30 }
  0xce   :  { %v105_v38 = vrot.slane %v104_v35, 2  ;;  %v93_v39 = vrot.slane %v92_v36, 1 }
  0xd0   :  { %v106_v40 = vadd.f32 %v105_v38, %v104_v35  ;;  %v94_v41 = vadd.f32 %v93_v39, %v92_v36 }
  0xd2   :  { %151 = vpush %v94_v41  ;;  %v107_v43 = vrot.slane %v106_v40, 1 }
  0xd4   :  { %v108_v44 = vadd.f32 %v107_v43, %v106_v40 }
  0xd6   :  { %153 = vpush %v108_v44 }
  0xd7   :  { %155 = vpush %v121_v45 }
 0x103   :  { %s152_s2 = spop %151 }
 0x104   :  { %v130_v52 = vstv %s152_s2 }
 0x105   :  { %v131_v55 = vsel %vm129_vm3, %v130_v52, 0.0 }
 0x107   :  { %s154_s28 = spop %153 }
 0x108   :  { %v110_v47 = vstv %s154_s28  ;;  %s156_s29 = spop %155 }
 0x109   :  { %v111_v49 = vmul.f32 0.5, %v110_v47  ;;  %v123_v50 = vstv %s156_s29 }
 0x10b   :  { %v124_v51 = vadd.f32 %v123_v50, %v111_v49 }
 0x10d   :  { %v125_v53 = vmul.f32 0.5, %v124_v51 }
 0x10f   :  { %v126_v54 = vadd.f32 58.812065, %v125_v53 }
 0x111   :  { %v133_v56 = vsel %vm132_vm4, %v126_v54, %v131_v55 }
 0x112   :  { %134 = vst [vmem:[#allocation8] sm:$0x1] %v133_v56 }
 0x113   :  { %214 = shalt.err (!%p211_p0)
}
 0x114   :  { %144 = dma.vmem_to_hbm [thread:$0]  %s142_s5, 16, %s279_s4, [#allocation5]  }
 0x115   :  { %227 = dma.done.wait [#allocation5], 16  }
 0x116   :  { %228 = vsyncadd [#allocation5], 4294967280 }
 0x117   :  { %148 = vsyncpa [#allocation4], 1 }
 0x118   :  { %149 = vsyncpa [#allocation7], 1 }
 0x119   :  { %150 = vsyncpa [#allocation5], 1 }

</bundles_post_ra>
